<compile_context>
chip_gen: v5e
topology: v5e:2x2
jax: 0.10.0
libtpu: 0.0.40
codegen_flags: <defaults>
</compile_context>

<pallas_src>
import functools

import jax
import jax.numpy as jnp
from jax.experimental import pallas as pl
from jax.experimental.pallas import tpu as pltpu


# ----------------------------------------------------------------------------
# helpers
# ----------------------------------------------------------------------------
class KeyGen:
    def __init__(self, key):
        self.key = key

    def __call__(self):
        self.key, sub = jax.random.split(self.key)
        return sub


def _tiles(M, N):
    TM = M if M <= 256 else 256
    TN = N if N <= 256 else 256
    return TM, TN


# ----------------------------------------------------------------------------
# Pallas kernel 1: fused  (X @ W) + shift  [+ residual] [+ ReLU]
#   X, W are bf16 (MXU), accumulation and epilogue in f32.
# ----------------------------------------------------------------------------
def _mm_kernel(x_ref, w_ref, sh_ref, o_ref, *, relu):
    acc = jnp.dot(x_ref[...], w_ref[...], preferred_element_type=jnp.float32)
    acc = acc + sh_ref[...]
    if relu:
        acc = jnp.maximum(acc, 0.0)
    o_ref[...] = acc.astype(o_ref.dtype)


def _mm_res_kernel(x_ref, w_ref, sh_ref, r_ref, o_ref, *, mode):
    acc = jnp.dot(x_ref[...], w_ref[...], preferred_element_type=jnp.float32)
    acc = acc + sh_ref[...]
    if mode == "add_relu":        # resnet bottleneck: relu(bn(conv) + identity)
        acc = jnp.maximum(acc + r_ref[...], 0.0)
    else:                         # "relu_add": bottle tail: relu(bn(conv)) + sc
        acc = jnp.maximum(acc, 0.0) + r_ref[...]
    o_ref[...] = acc.astype(o_ref.dtype)


@functools.lru_cache(maxsize=None)
def _get_mm_call(M, K, N, relu):
    TM, TN = _tiles(M, N)
    call = pl.pallas_call(
        functools.partial(_mm_kernel, relu=relu),
        out_shape=jax.ShapeDtypeStruct((M, N), jnp.float32),
        grid_spec=pltpu.PrefetchScalarGridSpec(
            num_scalar_prefetch=0,
            grid=(pl.cdiv(M, TM), pl.cdiv(N, TN)),
            in_specs=[
                pl.BlockSpec((TM, K), lambda i, j: (i, 0)),
                pl.BlockSpec((K, TN), lambda i, j: (0, j)),
                pl.BlockSpec((1, TN), lambda i, j: (0, j)),
            ],
            out_specs=pl.BlockSpec((TM, TN), lambda i, j: (i, j)),
        ),
        compiler_params=pltpu.CompilerParams(
            dimension_semantics=("parallel", "parallel"),
            vmem_limit_bytes=40 * 1024 * 1024,
        ),
    )
    return jax.jit(call)


@functools.lru_cache(maxsize=None)
def _get_mm_res_call(M, K, N, mode):
    TM, TN = _tiles(M, N)
    call = pl.pallas_call(
        functools.partial(_mm_res_kernel, mode=mode),
        out_shape=jax.ShapeDtypeStruct((M, N), jnp.float32),
        grid_spec=pltpu.PrefetchScalarGridSpec(
            num_scalar_prefetch=0,
            grid=(pl.cdiv(M, TM), pl.cdiv(N, TN)),
            in_specs=[
                pl.BlockSpec((TM, K), lambda i, j: (i, 0)),
                pl.BlockSpec((K, TN), lambda i, j: (0, j)),
                pl.BlockSpec((1, TN), lambda i, j: (0, j)),
                pl.BlockSpec((TM, TN), lambda i, j: (i, j)),
            ],
            out_specs=pl.BlockSpec((TM, TN), lambda i, j: (i, j)),
        ),
        compiler_params=pltpu.CompilerParams(
            dimension_semantics=("parallel", "parallel"),
            vmem_limit_bytes=40 * 1024 * 1024,
        ),
    )
    return jax.jit(call)


def matmul_fused(x, w, shift, relu=False):
    M, K = x.shape
    N = w.shape[1]
    return _get_mm_call(M, K, N, bool(relu))(
        x.astype(jnp.bfloat16), w, shift.reshape(1, N))


def matmul_fused_res(x, w, shift, res, mode):
    M, K = x.shape
    N = w.shape[1]
    return _get_mm_res_call(M, K, N, mode)(
        x.astype(jnp.bfloat16), w, shift.reshape(1, N),
        res.reshape(M, N).astype(jnp.float32))


# ----------------------------------------------------------------------------
# Pallas kernel 2: direct stride-1 3x3 conv (no 9x im2col).
#   Input is the zero-padded image width-concatenated over the 3 kw taps and
#   flattened to (B, (H+2)*W, 3*Cin).  The 3 kh taps are contiguous row ranges
#   of that flat tensor, so the kernel accumulates 3 matmuls per batch.
# ----------------------------------------------------------------------------
def _conv3_kernel(x_ref, w_ref, sh_ref, o_ref, *, HW, W, CM, relu):
    sh = sh_ref[...]
    for c0 in range(0, HW, CM):
        cm = min(CM, HW - c0)
        acc = jnp.dot(x_ref[0, c0:c0 + cm, :], w_ref[0],
                      preferred_element_type=jnp.float32)
        acc = acc + jnp.dot(x_ref[0, c0 + W:c0 + W + cm, :], w_ref[1],
                            preferred_element_type=jnp.float32)
        acc = acc + jnp.dot(x_ref[0, c0 + 2 * W:c0 + 2 * W + cm, :], w_ref[2],
                            preferred_element_type=jnp.float32)
        acc = acc + sh
        if relu:
            acc = jnp.maximum(acc, 0.0)
        o_ref[0, c0:c0 + cm, :] = acc.astype(o_ref.dtype)


@functools.lru_cache(maxsize=None)
def _get_conv3_call(B, H, W, Cin, Cout, relu):
    HW = H * W
    CM = HW if HW <= 392 else 392
    call = pl.pallas_call(
        functools.partial(_conv3_kernel, HW=HW, W=W, CM=CM, relu=relu),
        out_shape=jax.ShapeDtypeStruct((B, HW, Cout), jnp.float32),
        grid_spec=pltpu.PrefetchScalarGridSpec(
            num_scalar_prefetch=0,
            grid=(B,),
            in_specs=[
                pl.BlockSpec((1, (H + 2) * W, 3 * Cin), lambda b: (b, 0, 0)),
                pl.BlockSpec((3, 3 * Cin, Cout), lambda b: (0, 0, 0)),
                pl.BlockSpec((1, Cout), lambda b: (0, 0)),
            ],
            out_specs=pl.BlockSpec((1, HW, Cout), lambda b: (b, 0, 0)),
        ),
        compiler_params=pltpu.CompilerParams(
            dimension_semantics=("parallel",),
            vmem_limit_bytes=40 * 1024 * 1024,
        ),
    )
    return jax.jit(call)


def conv3x3_s1(x, p, relu=False):
    # x: (B,H,W,Cin) f32 ; p["w"]: (3, 3*Cin, Cout) bf16 ; p["shift"]: (Cout,) f32
    B, H, W, Cin = x.shape
    Cout = p["w"].shape[2]
    xb = x.astype(jnp.bfloat16)
    xp = jnp.pad(xb, ((0, 0), (1, 1), (1, 1), (0, 0)))
    xw = jnp.concatenate([xp[:, :, j:j + W, :] for j in range(3)], axis=-1)
    xw = xw.reshape(B, (H + 2) * W, 3 * Cin)
    out = _get_conv3_call(B, H, W, Cin, Cout, bool(relu))(
        xw, p["w"], p["shift"].reshape(1, Cout))
    return out.reshape(B, H, W, Cout)


# ----------------------------------------------------------------------------
# Pallas kernel 3: lane-dense window reduction (max / mean over pooling window)
#   windows stacked on the leading axis, channels stay on the lane axis.
# ----------------------------------------------------------------------------
def _win_reduce_kernel(p_ref, o_ref, *, nwin, mode):
    r = p_ref[0]
    for k in range(1, nwin):
        v = p_ref[k]
        r = jnp.maximum(r, v) if mode == "max" else r + v
    if mode == "mean":
        r = r * (1.0 / nwin)
    o_ref[...] = r


@functools.lru_cache(maxsize=None)
def _get_win_reduce_call(nwin, M, C, mode):
    TM = M if M <= 512 else 512
    call = pl.pallas_call(
        functools.partial(_win_reduce_kernel, nwin=nwin, mode=mode),
        out_shape=jax.ShapeDtypeStruct((M, C), jnp.float32),
        grid_spec=pltpu.PrefetchScalarGridSpec(
            num_scalar_prefetch=0,
            grid=(pl.cdiv(M, TM),),
            in_specs=[pl.BlockSpec((nwin, TM, C), lambda i: (0, i, 0))],
            out_specs=pl.BlockSpec((TM, C), lambda i: (i, 0)),
        ),
        compiler_params=pltpu.CompilerParams(dimension_semantics=("parallel",)),
    )
    return jax.jit(call)


def max_pool_3x3_s2_p1(x):
    B, H, W, C = x.shape
    k, s, pad = 3, 2, 1
    Ho = (H + 2 * pad - k) // s + 1
    Wo = (W + 2 * pad - k) // s + 1
    xp = jnp.pad(x, ((0, 0), (pad, pad), (pad, pad), (0, 0)),
                 constant_values=-jnp.inf)
    wins = [xp[:, i:i + s * Ho:s, j:j + s * Wo:s, :]
            for i in range(k) for j in range(k)]
    wins = jnp.stack(wins, axis=0).reshape(k * k, B * Ho * Wo, C)
    out = _get_win_reduce_call(k * k, B * Ho * Wo, C, "max")(wins)
    return out.reshape(B, Ho, Wo, C)


def avg_pool_2x2(x):
    B, H, W, C = x.shape
    Ho, Wo = H // 2, W // 2
    wins = [x[:, i::2, j::2, :][:, :Ho, :Wo, :] for i in range(2) for j in range(2)]
    wins = jnp.stack(wins, axis=0).reshape(4, B * Ho * Wo, C)
    out = _get_win_reduce_call(4, B * Ho * Wo, C, "mean")(wins)
    return out.reshape(B, Ho, Wo, C)


# ----------------------------------------------------------------------------
# Pallas kernel 4: global average pool  (B, HW, C) -> (B, C), lane-dense
# ----------------------------------------------------------------------------
def _gap_kernel(x_ref, o_ref, *, inv):
    o_ref[...] = jnp.sum(x_ref[...], axis=1) * inv


@functools.lru_cache(maxsize=None)
def _get_gap_call(B, HW, C):
    call = pl.pallas_call(
        functools.partial(_gap_kernel, inv=1.0 / HW),
        out_shape=jax.ShapeDtypeStruct((B, C), jnp.float32),
        grid_spec=pltpu.PrefetchScalarGridSpec(
            num_scalar_prefetch=0,
            grid=(1,),
            in_specs=[pl.BlockSpec((B, HW, C), lambda i: (0, 0, 0))],
            out_specs=pl.BlockSpec((B, C), lambda i: (0, 0)),
        ),
    )
    return jax.jit(call)


def global_avg_pool(x):
    B, H, W, C = x.shape
    return _get_gap_call(B, H * W, C)(x.reshape(B, H * W, C))


# ----------------------------------------------------------------------------
# Pallas kernel 5: MHSA attention core.
#   energy = q@k + q@r ; softmax over the WHOLE flattened (head,HW,HW) per batch
#   (mirrors the PyTorch .view(batch, -1) softmax) ; feature = v @ attention.
#   bf16 MXU inputs, f32 softmax.
# ----------------------------------------------------------------------------
def _mhsa_attn_kernel(q_ref, k_ref, v_ref, r_ref, o_ref):
    q = q_ref[0]        # (head, HW, dh) bf16
    k = k_ref[0]        # (head, dh, HW) bf16
    v = v_ref[0]        # (head, dh, HW) bf16
    r = r_ref[...]      # (head, dh, HW) bf16 (shared over batch)
    cc = jnp.einsum("hqd,hdk->hqk", q, k, preferred_element_type=jnp.float32)
    cp = jnp.einsum("hqd,hdk->hqk", q, r, preferred_element_type=jnp.float32)
    e = cc + cp
    m = jnp.max(e)                       # global max (softmax over everything)
    p = jnp.exp(e - m)
    attn = (p / jnp.sum(p)).astype(jnp.bfloat16)
    feat = jnp.einsum("hdq,hqk->hdk", v, attn, preferred_element_type=jnp.float32)
    o_ref[0] = feat


@functools.lru_cache(maxsize=None)
def _get_mhsa_call(B, head, HW, dh):
    call = pl.pallas_call(
        _mhsa_attn_kernel,
        out_shape=jax.ShapeDtypeStruct((B, head, dh, HW), jnp.float32),
        grid_spec=pltpu.PrefetchScalarGridSpec(
            num_scalar_prefetch=0,
            grid=(B,),
            in_specs=[
                pl.BlockSpec((1, head, HW, dh), lambda b: (b, 0, 0, 0)),
                pl.BlockSpec((1, head, dh, HW), lambda b: (b, 0, 0, 0)),
                pl.BlockSpec((1, head, dh, HW), lambda b: (b, 0, 0, 0)),
                pl.BlockSpec((head, dh, HW), lambda b: (0, 0, 0)),
            ],
            out_specs=pl.BlockSpec((1, head, dh, HW), lambda b: (b, 0, 0, 0)),
        ),
        compiler_params=pltpu.CompilerParams(
            dimension_semantics=("parallel",),
            vmem_limit_bytes=40 * 1024 * 1024,
        ),
    )
    return jax.jit(call)


# ----------------------------------------------------------------------------
# conv wrappers (pure-JAX glue + fused matmul kernels)
# ----------------------------------------------------------------------------
def conv1x1(x, p, relu=False, stride=1):
    if stride != 1:
        x = x[:, ::stride, ::stride, :]
    B, H, W, Cin = x.shape
    Cout = p["w"].shape[1]
    out = matmul_fused(x.reshape(B * H * W, Cin), p["w"], p["shift"], relu)
    return out.reshape(B, H, W, Cout)


def conv1x1_res(x, p, res, mode):
    B, H, W, Cin = x.shape
    Cout = p["w"].shape[1]
    out = matmul_fused_res(x.reshape(B * H * W, Cin), p["w"], p["shift"],
                           res, mode)
    return out.reshape(B, H, W, Cout)


def conv_im2col(x, p, k, stride, pad, relu):
    # used only for the 7x7/s2 stem conv and the two stride-2 3x3 convs
    B, H, W, Cin = x.shape
    Cout = p["w"].shape[1]
    Ho = (H + 2 * pad - k) // stride + 1
    Wo = (W + 2 * pad - k) // stride + 1
    xb = x.astype(jnp.bfloat16)
    xp = jnp.pad(xb, ((0, 0), (pad, pad), (pad, pad), (0, 0)))
    cols = []
    for i in range(k):
        for j in range(k):
            cols.append(xp[:, i:i + stride * Ho:stride, j:j + stride * Wo:stride, :])
    patches = jnp.stack(cols, axis=3).reshape(B * Ho * Wo, k * k * Cin)
    out = matmul_fused(patches, p["w"], p["shift"], relu)
    return out.reshape(B, Ho, Wo, Cout)


# ----------------------------------------------------------------------------
# parameter init (deterministic, synthetic) with BN/bias folding and bf16 cast
# ----------------------------------------------------------------------------
def _fold_bn(g, beta, rm, rv, eps=1e-5):
    scale = g / jnp.sqrt(rv + eps)
    shift = beta - rm * scale
    return scale, shift


def _rand_bn(kg, c):
    g = 1.0 + 0.1 * jax.random.normal(kg(), (c,), jnp.float32)
    beta = 0.1 * jax.random.normal(kg(), (c,), jnp.float32)
    rm = 0.1 * jax.random.normal(kg(), (c,), jnp.float32)
    rv = jnp.abs(jax.random.normal(kg(), (c,), jnp.float32)) * 0.1 + 0.9
    return _fold_bn(g, beta, rm, rv)


def make_conv(kg, cin, cout, k=1, bias=False, bn=True, layout="mat", pre_bn=None):
    """Kernel-ready conv(+BN) params.
    layout="mat": w -> (k*k*cin, cout) bf16        (1x1 / im2col convs)
    layout="d3":  w -> (3, 3*cin, cout) bf16       (direct stride-1 3x3 kernel)
    pre_bn: (scale, shift) of a BN applied to the conv INPUT, folded exactly
            (only used for k == 1)."""
    fan_in = cin * k * k
    w = jax.random.normal(kg(), (cout, cin, k, k), jnp.float32) * fan_in ** -0.5
    b = (jax.random.normal(kg(), (cout,), jnp.float32) * 0.01
         if bias else jnp.zeros((cout,), jnp.float32))
    if bn:
        scale, bshift = _rand_bn(kg, cout)
    else:
        scale = jnp.ones((cout,), jnp.float32)
        bshift = jnp.zeros((cout,), jnp.float32)

    wm = jnp.transpose(w, (2, 3, 1, 0)).reshape(k * k * cin, cout)
    wm = wm * scale[None, :]                 # fold output BN scale into weights
    shift = b * scale + bshift               # conv bias folded with BN shift
    if pre_bn is not None:                   # fold a BN on the input (1x1 conv)
        ps, psh = pre_bn
        shift = shift + psh @ wm
        wm = ps[:, None] * wm
    if layout == "d3":
        wm = wm.reshape(3, 3 * cin, cout)    # (kh, kw*cin, cout)
    return {"w": wm.astype(jnp.bfloat16), "shift": shift}


def init_bottleneck(kg, inplanes, planes, stride, downsample):
    p = {"conv1": make_conv(kg, inplanes, planes, 1), "stride": stride}
    if stride == 1:
        p["conv2"] = make_conv(kg, planes, planes, 3, layout="d3")
    else:
        p["conv2"] = make_conv(kg, planes, planes, 3)        # im2col path
    p["conv3"] = make_conv(kg, planes, planes * 4, 1)
    if downsample:
        p["down"] = make_conv(kg, inplanes, planes * 4, 1)
    return p


def init_mhsa(kg, height, width, dim, head):
    dh = dim // head
    r_h = jax.random.normal(kg(), (1, head, dh, 1, height), jnp.float32)
    r_w = jax.random.normal(kg(), (1, head, dh, width, 1), jnp.float32)
    r = (r_h + r_w).reshape(head, dh, height * width)   # torch .view(1,h,dh,-1)
    return {
        "head": head,
        "r": r.astype(jnp.bfloat16),
        "wq": make_conv(kg, dim, dim, 1, bias=True, bn=False),
        "wk": make_conv(kg, dim, dim, 1, bias=True, bn=False),
        "wv": make_conv(kg, dim, dim, 1, bias=True, bn=False),
    }


def init_bottle(kg, height, width, dim, head):
    d2, d4 = dim // 2, dim * 2
    p = {}
    p["b0_conv1"] = make_conv(kg, dim, d2, 1, bias=True)
    p["b0_mhsa"] = init_mhsa(kg, height, width, d2, head)
    bn2 = _rand_bn(kg, d2)                    # BN after the MHSA, folded forward
    p["b0_conv3"] = make_conv(kg, d2, d4, 1, bias=True, pre_bn=bn2)
    p["sc"] = make_conv(kg, dim, d4, 1, bias=True)
    for blk in ("b1", "b2"):
        p[blk + "_conv1"] = make_conv(kg, d4, d2, 1, bias=True)
        p[blk + "_conv2"] = make_conv(kg, d2, d2, 3, bias=True, layout="d3")
        p[blk + "_conv3"] = make_conv(kg, d2, d4, 1, bias=True)
    return p


def init_bot101(kg):
    p = {"conv1": make_conv(kg, 3, 64, 7)}

    def make_layer(inplanes, planes, blocks, stride):
        layer = [init_bottleneck(kg, inplanes, planes, stride, True)]
        for _ in range(blocks - 1):
            layer.append(init_bottleneck(kg, planes * 4, planes, 1, False))
        return layer

    p["layer1"] = make_layer(64, 64, 3, 1)
    p["layer2"] = make_layer(256, 128, 4, 2)
    p["layer3"] = make_layer(512, 256, 23, 2)        # ResNet-101: 23 blocks
    p["layer4"] = init_bottle(kg, 14, 14, 1024, 4)   # BoTNet Bottle + MHSA
    fc_w = jax.random.normal(kg(), (1000, 2048), jnp.float32) * (1.0 / 2048 ** 0.5)
    fc_b = jax.random.normal(kg(), (1000,), jnp.float32) * 0.01
    p["fc_w"] = jnp.pad(fc_w.T, ((0, 0), (0, 24))).astype(jnp.bfloat16)  # N->1024
    p["fc_shift"] = jnp.pad(fc_b, (0, 24))
    return p


# ----------------------------------------------------------------------------
# forward passes
# ----------------------------------------------------------------------------
def bottleneck_forward(x, p):
    out = conv1x1(x, p["conv1"], relu=True)
    if p["stride"] == 1:
        out = conv3x3_s1(out, p["conv2"], relu=True)
    else:
        out = conv_im2col(out, p["conv2"], 3, p["stride"], 1, relu=True)
    if "down" in p:
        idn = conv1x1(x, p["down"], stride=p["stride"])
    else:
        idn = x
    return conv1x1_res(out, p["conv3"], idn, mode="add_relu")


def mhsa_forward(x, mp):
    B, H, W, dim = x.shape
    head = mp["head"]
    dh = dim // head
    HW = H * W
    q = conv1x1(x, mp["wq"])
    k = conv1x1(x, mp["wk"])
    v = conv1x1(x, mp["wv"])

    def chan_spatial(t):   # (B,H,W,dim) -> (B, head, dh, HW) (== torch .view)
        return jnp.transpose(t.reshape(B, HW, head, dh), (0, 2, 3, 1))

    qh = jnp.transpose(chan_spatial(q), (0, 1, 3, 2)).astype(jnp.bfloat16)
    kh = chan_spatial(k).astype(jnp.bfloat16)
    vh = chan_spatial(v).astype(jnp.bfloat16)
    feat = _get_mhsa_call(B, head, HW, dh)(qh, kh, vh, mp["r"])
    feat = jnp.transpose(feat.reshape(B, dim, H, W), (0, 2, 3, 1))   # to NHWC
    return avg_pool_2x2(feat)                                        # AvgPool2d(2,2)


def bottle_forward(x, p):
    f0 = x
    # block0: conv+bn -> MHSA (+avgpool) -> [bn2 folded] conv+bn -> relu
    f = conv1x1(f0, p["b0_conv1"])
    f = mhsa_forward(f, p["b0_mhsa"])
    f1 = conv1x1(f, p["b0_conv3"], relu=True)
    # block1: conv+bn -> conv3x3+bn -> conv+bn -> relu
    g = conv1x1(f1, p["b1_conv1"])
    g = conv3x3_s1(g, p["b1_conv2"])
    f2 = conv1x1(g, p["b1_conv3"], relu=True)
    # block2 + shortcut fused into the final conv:  relu(bn(conv)) + shortcut
    h = conv1x1(f2, p["b2_conv1"])
    h = conv3x3_s1(h, p["b2_conv2"])
    sc = conv1x1(f0, p["sc"], stride=2)
    return conv1x1_res(h, p["b2_conv3"], sc, mode="relu_add")


def bot101_forward(x_nchw, params):
    x = jnp.transpose(x_nchw, (0, 2, 3, 1)).astype(jnp.float32)   # NCHW -> NHWC
    x = conv_im2col(x, params["conv1"], 7, 2, 3, relu=True)
    x = max_pool_3x3_s2_p1(x)
    for blk in params["layer1"]:
        x = bottleneck_forward(x, blk)
    for blk in params["layer2"]:
        x = bottleneck_forward(x, blk)
    for blk in params["layer3"]:
        x = bottleneck_forward(x, blk)
    x = bottle_forward(x, params["layer4"])            # custom layer4 (Bottle+MHSA)
    x = global_avg_pool(x)                              # (B, 2048)
    logits = matmul_fused(x, params["fc_w"], params["fc_shift"], relu=False)
    return logits[:, :1000]


# ----------------------------------------------------------------------------
if __name__ == "__main__":
    key = jax.random.PRNGKey(0)
    kx, kp = jax.random.split(key)
    # ResNet-101 + MHSA@14x14 requires 224x224 inputs; batch kept small (2).
    x = jax.random.normal(kx, (2, 3, 224, 224), jnp.float32)   # NCHW like PyTorch
    params = init_bot101(KeyGen(kp))

    out = bot101_forward(x, params)
    out = jax.block_until_ready(out)

    assert out.shape == (2, 1000), out.shape
    assert bool(jnp.all(jnp.isfinite(out)))
    print("KERNEL_OK")
</pallas_src>

<mosaic_0001>
module attributes {stable_mosaic.version = 11 : i64} {
  func.func @_mm_kernel(%arg0: i32, %arg1: i32, %arg2: memref<256x147xbf16, #tpu.memory_space<vmem>>, %arg3: memref<147x64xbf16, #tpu.memory_space<vmem>>, %arg4: memref<1x64xf32, #tpu.memory_space<vmem>>, %arg5: memref<256x64xf32, #tpu.memory_space<vmem>>) attributes {dimension_semantics = [#tpu.dimension_semantics<parallel>, #tpu.dimension_semantics<parallel>], iteration_bounds = array<i64: 98, 1>, scalar_prefetch = 0 : i64, scratch_operands = 0 : i64, tpu.core_type = #tpu.core_type<tc>, window_params = [{transform_indices = @transform_0, window_bounds = array<i64: 256, 147>}, {transform_indices = @transform_1, window_bounds = array<i64: 147, 64>}, {transform_indices = @transform_2, window_bounds = array<i64: 1, 64>}, {transform_indices = @transform_3, window_bounds = array<i64: 256, 64>}]} {
    %c0 = arith.constant 0 : index
    %c0_0 = arith.constant 0 : index
    %0 = vector.load %arg2[%c0, %c0_0] : memref<256x147xbf16, #tpu.memory_space<vmem>>, vector<256x147xbf16>
    %c0_1 = arith.constant 0 : index
    %c0_2 = arith.constant 0 : index
    %1 = vector.load %arg3[%c0_1, %c0_2] : memref<147x64xbf16, #tpu.memory_space<vmem>>, vector<147x64xbf16>
    %cst = arith.constant dense<0.000000e+00> : vector<256x64xf32>
    %2 = tpu.matmul %0, %1, %cst {dimension_numbers = #tpu.dot_dimension_numbers<[1], [0], [0], [1], [0, 0, 1, 1], [], []>} : vector<256x147xbf16>, vector<147x64xbf16>, vector<256x64xf32> -> vector<256x64xf32>
    %c0_3 = arith.constant 0 : index
    %c0_4 = arith.constant 0 : index
    %3 = vector.load %arg4[%c0_3, %c0_4] : memref<1x64xf32, #tpu.memory_space<vmem>>, vector<1x64xf32>
    %4 = vector.broadcast %3 : vector<1x64xf32> to vector<256x64xf32>
    %5 = arith.addf %2, %4 : vector<256x64xf32>
    %cst_5 = arith.constant 0.000000e+00 : f32
    %6 = vector.broadcast %cst_5 : f32 to vector<256x64xf32>
    %7 = arith.maximumf %5, %6 : vector<256x64xf32>
    %c0_6 = arith.constant 0 : index
    %c0_7 = arith.constant 0 : index
    %8 = vector.load %arg5[%c0_6, %c0_7] : memref<256x64xf32, #tpu.memory_space<vmem>>, vector<256x64xf32>
    tpu.vector_store %arg5[%c0_6, %c0_7], %7 {strides = array<i32>} : memref<256x64xf32, #tpu.memory_space<vmem>>, vector<256x64xf32>,
    return
  }
  func.func @transform_0(%arg0: i32, %arg1: i32) -> (i32, i32) {
    %c0_i32 = arith.constant 0 : i32
    %c0_i32_0 = arith.constant 0 : i32
    return %arg0, %c0_i32 : i32, i32
  }
  func.func @transform_1(%arg0: i32, %arg1: i32) -> (i32, i32) {
    %c0_i32 = arith.constant 0 : i32
    %c0_i32_0 = arith.constant 0 : i32
    return %c0_i32, %arg1 : i32, i32
  }
  func.func @transform_2(%arg0: i32, %arg1: i32) -> (i32, i32) {
    %c0_i32 = arith.constant 0 : i32
    %c0_i32_0 = arith.constant 0 : i32
    return %c0_i32, %arg1 : i32, i32
  }
  func.func @transform_3(%arg0: i32, %arg1: i32) -> (i32, i32) {
    %c0_i32 = arith.constant 0 : i32
    return %arg0, %arg1 : i32, i32
  }
}

</mosaic_0001>

<bundles_post_ra>
// kernel: tpu_custom_call.1
= control target key start
LH: loop header
LB: loop body
LE: loop exit
PB: predicated region body
PF: predicated region fallthrough
CT: control target
= control target key end

     0   :  { %s1203_s12 = smov 0   ;;  %s1205_s13 = smov 0   ;;  %s1464_s0 = inlined_call_operand.vmem [shape: bf16[25088,147], index: 0, kind: input, shape index: {}]   ;;  %s1465_s1 = inlined_call_operand.vmem [shape: bf16[147,64], index: 1, kind: input, shape index: {}]   ;;  %s1466_s2 = inlined_call_operand.vmem [shape: f32[1,64], index: 2, kind: input, shape index: {}]   ;;  %s1467_s3 = inlined_call_operand.vmem [shape: f32[25088,64], index: 3, kind: output, shape index: {}]  }
   0x1   :  { %s1207_s14 = smov 0  }
   0x2 LB: > { %s25_s15 = sadd.s32 1, %s1176_s13  ;;  %p892_p0 = scmp.ge.s32.totalorder %s1180_s14, 1  ;;  %s1180_s14 = sphi %s1207_s14, %s13_s14   ;;  %s1176_s13 = sphi %s1205_s13, %s1469_s13   ;;  %s1172_s12 = sphi %s1203_s12, %s1468_s12  }
   0x3   : > { %p27_p1 = scmp.ge.s32.totalorder %s25_s15, 98  ;;  %p170_p2 = scmp.lt.s32.totalorder %s1180_s14, 99 }
   0x5   : > { %s1471_s15 = smov (%p27_p1, %s25_s15), 0  ;;  %p171_p3 = pnand %p892_p0, %p170_p2 }
   0x6   : > { %s893_s20 = sshll.u32 (!%p171_p3), %s1172_s12, 5 }
   0x7   : > { %174 = sbr.rel (%p171_p3) target bundleno = 303 (0x12f), region = 32  ;;  %p206_p4 = scmp.lt.s32.totalorder (!%p171_p3), %s893_s20, 3135 }
   0xc   : > { %v1120_v0 = vld [vmem:[%s1465_s1 + $0x38] sm:$0xff]  ;;  %v279_v1 = vld [vmem:[%s1465_s1 + $0x48] sm:$0x3]  ;;  %vm534_vm0 = vcmask 1040384   ;;  %vm535_vm1 = vcmask 1041408   ;;  %v1119_v3 = vld [vmem:[%s1465_s1 + $0x30] sm:$0xff] }
   0xd   : > { %v465_v2 = vunpack.c.l.b16 %v279_v1  ;;  %541 = vmatpush.bf16.msra.mxu0 %v1120_v0  ;;  %1122 = vmatpush.bf16.msra.mxu2 %v1120_v0  ;;  %v1182_v4 = vmov 65535   ;;  %s1473_s20 = smov (!%p206_p4, %s893_s20), 3135  ;;  %v1118_v9 = vld [vmem:[%s1465_s1 + $0x28] sm:$0xff]  ;;  %v1121_v10 = vld [vmem:[%s1465_s1 + $0x40] sm:$0xff]  ;;  %vm485_vm2 = vcmask 154624   ;;  %v1116_v18 = vld [vmem:[%s1465_s1 + $0x18] sm:$0xff] }
   0xe   : > { %v536_v5 = vsel %vm534_vm0, 4294967295, %v1182_v4  ;;  %s1080_s25 = sshll.u32 %s1473_s20, 3  ;;  %v1117_v14 = vld [vmem:[%s1465_s1 + $0x20] sm:$0xff]  ;;  %v1115_v19 = vld [vmem:[%s1465_s1 + $0x10] sm:$0xff]  ;;  %v1114_v20 = vld [vmem:[%s1465_s1 + $0x8] sm:$0xff]  ;;  %vm751_vm3 = vcmask 523264  }
   0xf   : > { %v475_v6 = vpack.c.b16 %v465_v2, %v465_v2  ;;  %v537_v7 = vsel %vm535_vm1, %v536_v5, 0  ;;  %s1244_s30 = scalar_lea.vmem %s1464_s0, %s1080_s25  ;;  %v1113_v26 = vld [vmem:[%s1465_s1] sm:$0xff]  ;;  %s1352_s22 = scalar_lea.vmem %s1467_s3, %s1080_s25 }
  0x10   : > { %v1081_v11 = vld [vmem:[%s1244_s30 + $0x4] sm:$0xf]  ;;  %v902_v12 = vld [vmem:[%s1244_s30 + $0x8] sm:$0xf0]  ;;  %v1099_v15 = vld [vmem:[%s1244_s30 + $0x94] sm:$0xf] }
  0x11   : > { %v539_v8 = vand.u32 %v537_v7, %v475_v6  ;;  %542 = vmatpush.bf16.msra.mxu0 %v1119_v3  ;;  %1123 = vmatpush.bf16.msra.mxu2 %v1119_v3  ;;  %v905_v13 = vor.u32 %v1081_v11, %v902_v12  ;;  %v974_v16 = vld [vmem:[%s1244_s30 + $0x98] sm:$0xf0]  ;;  %v1083_v21 = vld [vmem:[%s1244_s30 + $0x14] sm:$0xf]  ;;  %v1101_v23 = vld [vmem:[%s1244_s30 + $0xa4] sm:$0xf] }
  0x12   : > { %v977_v17 = vor.u32 %v1099_v15, %v974_v16  ;;  %v910_v22 = vld [vmem:[%s1244_s30 + $0x18] sm:$0xf0]  ;;  %v982_v24 = vld [vmem:[%s1244_s30 + $0xa8] sm:$0xf0]  ;;  %v900_v27 = vld [vmem:[%s1244_s30] sm:$0xf] }
  0x13   : > { %636 = vmatpush.bf16.msra.mxu1 %v539_v8  ;;  %1130 = vmatpush.bf16.msra.mxu3 %v539_v8  ;;  %v913_v25 = vor.u32 %v1083_v21, %v910_v22  ;;  %v1082_v28 = vld [vmem:[%s1244_s30 + $0x4] sm:$0xf0]  ;;  %v964_v29 = vld [vmem:[%s1244_s30 + $0x80] sm:$0xf]  ;;  %v985_v31 = vor.u32 %v1101_v23, %v982_v24  ;;  %v1085_v34 = vld [vmem:[%s1244_s30 + $0x24] sm:$0xf] }
  0x14   : > { %v1098_v30 = vld [vmem:[%s1244_s30 + $0x84] sm:$0xf0]  ;;  %v901_v32 = vor.u32 %v1082_v28, %v900_v27  ;;  %v918_v35 = vld [vmem:[%s1244_s30 + $0x28] sm:$0xf0]  ;;  %v1103_v36 = vld [vmem:[%s1244_s30 + $0xb4] sm:$0xf] }
  0x15   : > { %543 = vmatpush.bf16.msra.mxu0 %v1118_v9  ;;  %1124 = vmatpush.bf16.msra.mxu2 %v1118_v9  ;;  %v965_v33 = vor.u32 %v1098_v30, %v964_v29  ;;  %v990_v37 = vld [vmem:[%s1244_s30 + $0xb8] sm:$0xf0]  ;;  %v921_v38 = vor.u32 %v1085_v34, %v918_v35  ;;  %v908_v39 = vld [vmem:[%s1244_s30 + $0x10] sm:$0xf]  ;;  %v1084_v40 = vld [vmem:[%s1244_s30 + $0x14] sm:$0xf0] }
  0x16   : > { %v972_v41 = vld [vmem:[%s1244_s30 + $0x90] sm:$0xf]  ;;  %v1100_v42 = vld [vmem:[%s1244_s30 + $0x94] sm:$0xf0]  ;;  %v993_v43 = vor.u32 %v1103_v36, %v990_v37  ;;  %v909_v44 = vor.u32 %v1084_v40, %v908_v39  ;;  %v1087_v46 = vld [vmem:[%s1244_s30 + $0x34] sm:$0xf] }
  0x17   : > { %637 = vmatpush.bf16.msra.mxu1 %v1121_v10  ;;  %1131 = vmatpush.bf16.msra.mxu3 %v1121_v10  ;;  %v973_v45 = vor.u32 %v1100_v42, %v972_v41  ;;  %v926_v47 = vld [vmem:[%s1244_s30 + $0x38] sm:$0xf0]  ;;  %v1105_v48 = vld [vmem:[%s1244_s30 + $0xc4] sm:$0xf]  ;;  %v998_v49 = vld [vmem:[%s1244_s30 + $0xc8] sm:$0xf0] }
  0x18   : > { %v929_v50 = vor.u32 %v1087_v46, %v926_v47  ;;  %v916_v51 = vld [vmem:[%s1244_s30 + $0x20] sm:$0xf]  ;;  %v1086_v52 = vld [vmem:[%s1244_s30 + $0x24] sm:$0xf0]  ;;  %v1001_v55 = vor.u32 %v1105_v48, %v998_v49  ;;  %v1089_v58 = vld [vmem:[%s1244_s30 + $0x44] sm:$0xf] }
  0x19   : > { %544 = vmatpush.bf16.msra.mxu0 %v1117_v14  ;;  %1125 = vmatpush.bf16.msra.mxu2 %v1117_v14  ;;  %v980_v53 = vld [vmem:[%s1244_s30 + $0xa0] sm:$0xf]  ;;  %v1102_v54 = vld [vmem:[%s1244_s30 + $0xa4] sm:$0xf0]  ;;  %v917_v56 = vor.u32 %v1086_v52, %v916_v51  ;;  %v934_v59 = vld [vmem:[%s1244_s30 + $0x48] sm:$0xf0] }
  0x1a   : > { %1062 = vmatmul.msk.bf16.vlgmr.msra.gmra.mxu1 %vm485_vm2, %v905_v13  ;;  %1071 = vmatmul.msk.bf16.vlgmr.msra.gmra.mxu3 %vm485_vm2, %v977_v17  ;;  %v981_v57 = vor.u32 %v1102_v54, %v980_v53  ;;  %v1107_v60 = vld [vmem:[%s1244_s30 + $0xd4] sm:$0xf]  ;;  %v1006_v61 = vld [vmem:[%s1244_s30 + $0xd8] sm:$0xf0]  ;;  %v937_v62 = vor.u32 %v1089_v58, %v934_v59  ;;  %v924_v63 = vld [vmem:[%s1244_s30 + $0x30] sm:$0xf] }
  0x1b   : > { %v1088_v0 = vld [vmem:[%s1244_s30 + $0x34] sm:$0xf0]  ;;  %v988_v1 = vld [vmem:[%s1244_s30 + $0xb0] sm:$0xf]  ;;  %v1009_v3 = vor.u32 %v1107_v60, %v1006_v61  ;;  %v1091_v6 = vld [vmem:[%s1244_s30 + $0x54] sm:$0xf] }
  0x1c   : > { %v1104_v2 = vld [vmem:[%s1244_s30 + $0xb4] sm:$0xf0]  ;;  %v925_v4 = vor.u32 %v1088_v0, %v924_v63  ;;  %v942_v7 = vld [vmem:[%s1244_s30 + $0x58] sm:$0xf0]  ;;  %v1109_v8 = vld [vmem:[%s1244_s30 + $0xe4] sm:$0xf] }
  0x1d   : > { %545 = vmatpush.bf16.msra.mxu0 %v1116_v18  ;;  %1126 = vmatpush.bf16.msra.mxu2 %v1116_v18  ;;  %v989_v5 = vor.u32 %v1104_v2, %v988_v1  ;;  %v1014_v9 = vld [vmem:[%s1244_s30 + $0xe8] sm:$0xf0]  ;;  %v945_v10 = vor.u32 %v1091_v6, %v942_v7  ;;  %v932_v11 = vld [vmem:[%s1244_s30 + $0x40] sm:$0xf]  ;;  %v1090_v12 = vld [vmem:[%s1244_s30 + $0x44] sm:$0xf0] }
  0x1e   : > { %v996_v13 = vld [vmem:[%s1244_s30 + $0xc0] sm:$0xf]  ;;  %v1106_v14 = vld [vmem:[%s1244_s30 + $0xc4] sm:$0xf0]  ;;  %v1017_v15 = vor.u32 %v1109_v8, %v1014_v9  ;;  %v933_v16 = vor.u32 %v1090_v12, %v932_v11  ;;  %v1093_v18 = vld [vmem:[%s1244_s30 + $0x64] sm:$0xf] }
  0x1f   : > { %v997_v17 = vor.u32 %v1106_v14, %v996_v13  ;;  %v1022_v21 = vld [vmem:[%s1244_s30 + $0xf8] sm:$0xf0]  ;;  %v940_v23 = vld [vmem:[%s1244_s30 + $0x50] sm:$0xf]  ;;  %v1092_v24 = vld [vmem:[%s1244_s30 + $0x54] sm:$0xf0] }
  0x20   : > { %v941_v28 = vor.u32 %v1092_v24, %v940_v23  ;;  %v1095_v30 = vld [vmem:[%s1244_s30 + $0x74] sm:$0xf]  ;;  %v1094_v34 = vld [vmem:[%s1244_s30 + $0x64] sm:$0xf0]  ;;  %v1012_v35 = vld [vmem:[%s1244_s30 + $0xe0] sm:$0xf] }
  0x21   : > { %546 = vmatpush.bf16.msra.mxu0 %v1115_v19  ;;  %1127 = vmatpush.bf16.msra.mxu2 %v1115_v19  ;;  %v950_v19 = vld [vmem:[%s1244_s30 + $0x68] sm:$0xf0]  ;;  %v1110_v36 = vld [vmem:[%s1244_s30 + $0xe4] sm:$0xf0]  ;;  %v1097_v39 = vld [vmem:[%s1244_s30 + $0x84] sm:$0xf] }
  0x22   : > { %v953_v22 = vor.u32 %v1093_v18, %v950_v19  ;;  %v966_v40 = vld [vmem:[%s1244_s30 + $0x88] sm:$0xf0]  ;;  %v956_v42 = vld [vmem:[%s1244_s30 + $0x70] sm:$0xf]  ;;  %v1112_v46 = vld [vmem:[%s1244_s30 + $0xf4] sm:$0xf0] }
  0x23   : > { %v969_v41 = vor.u32 %v1097_v39, %v966_v40  ;;  %v1344_v51 = vld [vmem:[%s1466_s2] ss:$0 sm:$0xff] }
  0x25   : > { %547 = vmatpush.bf16.msra.mxu0 %v1114_v20  ;;  %1128 = vmatpush.bf16.msra.mxu2 %v1114_v20  ;;  %v1111_v20 = vld [vmem:[%s1244_s30 + $0xf4] sm:$0xf] }
  0x26   : > { %v1025_v27 = vor.u32 %v1111_v20, %v1022_v21 }
  0x29   : > { %548 = vmatpush.bf16.msra.mxu0 %v1113_v26  ;;  %1129 = vmatpush.bf16.msra.mxu2 %v1113_v26  ;;  %v1108_v26 = vld [vmem:[%s1244_s30 + $0xd4] sm:$0xf0] }
  0x2a   : > { %1063 = vmatmul.msk.bf16.gmra.mxu1 %vm485_vm2, %v913_v25  ;;  %1072 = vmatmul.msk.bf16.gmra.mxu3 %vm485_vm2, %v985_v31  ;;  %v1004_v25 = vld [vmem:[%s1244_s30 + $0xd0] sm:$0xf]  ;;  %v958_v31 = vld [vmem:[%s1244_s30 + $0x78] sm:$0xf0] }
  0x2b   : > { %v1005_v29 = vor.u32 %v1108_v26, %v1004_v25 }
  0x2c   : > { %549 = vmatmul.bf16.vlgmr.msra.gmra.mxu0 %v901_v32  ;;  %589 = vmatmul.bf16.vlgmr.msra.gmra.mxu2 %v965_v33  ;;  %v961_v32 = vor.u32 %v1095_v30, %v958_v31  ;;  %v948_v33 = vld [vmem:[%s1244_s30 + $0x60] sm:$0xf] }
  0x2d   : > { %v949_v37 = vor.u32 %v1094_v34, %v948_v33 }
  0x3a   : > { %1064 = vmatmul.msk.bf16.gmra.mxu1 %vm485_vm2, %v921_v38  ;;  %1073 = vmatmul.msk.bf16.gmra.mxu3 %vm485_vm2, %v993_v43  ;;  %v1013_v38 = vor.u32 %v1110_v36, %v1012_v35  ;;  %v1096_v43 = vld [vmem:[%s1244_s30 + $0x74] sm:$0xf0] }
  0x3b   : > { %v957_v47 = vor.u32 %v1096_v43, %v956_v42 }
  0x3c   : > { %554 = vmatmul.bf16.gmra.mxu0 %v909_v44  ;;  %594 = vmatmul.bf16.gmra.mxu2 %v973_v45  ;;  %v1020_v45 = vld [vmem:[%s1244_s30 + $0xf0] sm:$0xf] }
  0x3d   : > { %v1021_v48 = vor.u32 %v1112_v46, %v1020_v45 }
  0x4a   : > { %1065 = vmatmul.msk.bf16.gmra.mxu1 %vm485_vm2, %v929_v50  ;;  %1074 = vmatmul.msk.bf16.gmra.mxu3 %vm485_vm2, %v1001_v55 }
  0x4c   : > { %559 = vmatmul.bf16.gmra.mxu0 %v917_v56  ;;  %599 = vmatmul.bf16.gmra.mxu2 %v981_v57 }
  0x5a   : > { %1066 = vmatmul.msk.bf16.gmra.mxu1 %vm485_vm2, %v937_v62  ;;  %1075 = vmatmul.msk.bf16.gmra.mxu3 %vm485_vm2, %v1009_v3 }
  0x5c   : > { %564 = vmatmul.bf16.gmra.mxu0 %v925_v4  ;;  %604 = vmatmul.bf16.gmra.mxu2 %v989_v5 }
  0x6a   : > { %1067 = vmatmul.msk.bf16.gmra.mxu1 %vm485_vm2, %v945_v10  ;;  %1076 = vmatmul.msk.bf16.gmra.mxu3 %vm485_vm2, %v1017_v15 }
  0x6c   : > { %569 = vmatmul.bf16.gmra.mxu0 %v933_v16  ;;  %609 = vmatmul.bf16.gmra.mxu2 %v997_v17 }
  0x7a   : > { %1068 = vmatmul.msk.bf16.gmra.mxu1 %vm485_vm2, %v953_v22  ;;  %1077 = vmatmul.msk.bf16.gmra.mxu3 %vm485_vm2, %v1025_v27 }
  0x7c   : > { %574 = vmatmul.bf16.gmra.mxu0 %v941_v28  ;;  %614 = vmatmul.bf16.gmra.mxu2 %v1005_v29 }
  0x8a   : > { %1069 = vmatmul.msk.bf16.gmra.mxu1 %vm485_vm2, %v961_v32 }
  0x8c   : > { %579 = vmatmul.bf16.gmra.mxu0 %v949_v37  ;;  %619 = vmatmul.bf16.gmra.mxu2 %v1013_v38 }
  0x97   : > { %v639_v44 = vpop.f32.mrf.mxu1 }
  0x9a   : > { %1070 = vmatmul.msk.bf16.gmra.mxu1 %vm485_vm2, %v969_v41 }
  0x9c   : > { %584 = vmatmul.bf16.gmra.mxu0 %v957_v47  ;;  %624 = vmatmul.bf16.gmra.mxu2 %v1021_v48 }
  0x9d   : > { %v684_v52 = vpop.f32.mrf.mxu3 }
  0x9f   : > { %v641_v49 = vpop.f32.mrf.mxu1 }
  0xa5   : > { %v686_v61 = vpop.f32.mrf.mxu3 }
  0xa7   : > { %v644_v50 = vpop.f32.mrf.mxu1 }
  0xa9   : > { %v550_v53 = vpop.f32.mrf.mxu0 }
  0xaa   : > { %v551_v54 = vadd.f32 %v1344_v51, %v550_v53 }
  0xac   : > { %v640_v55 = vadd.f32 %v639_v44, %v551_v54 }
  0xad   : > { %v689_v5 = vpop.f32.mrf.mxu3 }
  0xae   : > { %v719_v56 = vmax.f32 %v640_v55, 0.0 }
  0xaf   : > { %v646_v57 = vpop.f32.mrf.mxu1  ;;  %v1356_v58 = vpop.f32.mrf.mxu2 }
  0xb0   : > { %752 = vst.msk [vmem:[%s1352_s22] sm:$0xff] %vm751_vm3, %v719_v56 }
  0xb1   : > { %v552_v59 = vpop.f32.mrf.mxu0 }
  0xb2   : > { %v553_v60 = vadd.f32 %v1344_v51, %v552_v59 }
  0xb4   : > { %v642_v62 = vadd.f32 %v641_v49, %v553_v60 }
  0xb5   : > { %v691_v17 = vpop.f32.mrf.mxu3 }
  0xb6   : > { %v720_v63 = vmax.f32 %v642_v62, 0.0 }
  0xb7   : > { %v649_v0 = vpop.f32.mrf.mxu1  ;;  %v1361_v1 = vpop.f32.mrf.mxu2 }
  0xb8   : > { %753 = vst.msk [vmem:[%s1352_s22 + $0x8] sm:$0xff] %vm751_vm3, %v720_v63 }
  0xb9   : > { %v555_v2 = vpop.f32.mrf.mxu0 }
  0xba   : > { %v556_v3 = vadd.f32 %v1344_v51, %v555_v2 }
  0xbc   : > { %v645_v4 = vadd.f32 %v644_v50, %v556_v3 }
  0xbd   : > { %v694_v28 = vpop.f32.mrf.mxu3 }
  0xbe   : > { %v721_v6 = vmax.f32 %v645_v4, 0.0 }
  0xbf   : > { %v651_v7 = vpop.f32.mrf.mxu1  ;;  %v595_v8 = vpop.f32.mrf.mxu2 }
  0xc0   : > { %754 = vst.msk [vmem:[%s1352_s22 + $0x10] sm:$0xff] %vm751_vm3, %v721_v6  ;;  %v596_v9 = vadd.f32 %v1344_v51, %v595_v8 }
  0xc1   : > { %v557_v10 = vpop.f32.mrf.mxu0 }
  0xc2   : > { %v558_v11 = vadd.f32 %v1344_v51, %v557_v10  ;;  %v685_v12 = vadd.f32 %v684_v52, %v596_v9 }
  0xc4   : > { %v647_v13 = vadd.f32 %v646_v57, %v558_v11  ;;  %v737_v14 = vmax.f32 %v685_v12, 0.0 }
  0xc5   : > { %v696_v41 = vpop.f32.mrf.mxu3 }
  0xc6   : > { %v722_v15 = vmax.f32 %v647_v13, 0.0  ;;  %770 = vst.msk [vmem:[%s1352_s22 + $0x90] sm:$0xff] %vm751_vm3, %v737_v14 }
  0xc7   : > { %v654_v16 = vpop.f32.mrf.mxu1  ;;  %v597_v18 = vpop.f32.mrf.mxu2 }
  0xc8   : > { %755 = vst.msk [vmem:[%s1352_s22 + $0x18] sm:$0xff] %vm751_vm3, %v722_v15  ;;  %v598_v19 = vadd.f32 %v1344_v51, %v597_v18 }
  0xc9   : > { %v560_v20 = vpop.f32.mrf.mxu0 }
  0xca   : > { %v561_v21 = vadd.f32 %v1344_v51, %v560_v20  ;;  %v687_v22 = vadd.f32 %v686_v61, %v598_v19 }
  0xcc   : > { %v650_v23 = vadd.f32 %v649_v0, %v561_v21  ;;  %v738_v24 = vmax.f32 %v687_v22, 0.0 }
  0xcd   : > { %v699_v54 = vpop.f32.mrf.mxu3 }
  0xce   : > { %v723_v25 = vmax.f32 %v650_v23, 0.0  ;;  %771 = vst.msk [vmem:[%s1352_s22 + $0x98] sm:$0xff] %vm751_vm3, %v738_v24 }
  0xcf   : > { %v656_v26 = vpop.f32.mrf.mxu1  ;;  %v600_v27 = vpop.f32.mrf.mxu2 }
  0xd0   : > { %756 = vst.msk [vmem:[%s1352_s22 + $0x20] sm:$0xff] %vm751_vm3, %v723_v25  ;;  %v601_v29 = vadd.f32 %v1344_v51, %v600_v27 }
  0xd1   : > { %v562_v30 = vpop.f32.mrf.mxu0 }
  0xd2   : > { %v563_v31 = vadd.f32 %v1344_v51, %v562_v30  ;;  %v690_v32 = vadd.f32 %v689_v5, %v601_v29 }
  0xd4   : > { %v652_v33 = vadd.f32 %v651_v7, %v563_v31  ;;  %v739_v34 = vmax.f32 %v690_v32, 0.0 }
  0xd5   : > { %v701_v5 = vpop.f32.mrf.mxu3 }
  0xd6   : > { %v724_v35 = vmax.f32 %v652_v33, 0.0  ;;  %772 = vst.msk [vmem:[%s1352_s22 + $0xa0] sm:$0xff] %vm751_vm3, %v739_v34 }
  0xd7   : > { %v659_v36 = vpop.f32.mrf.mxu1  ;;  %v602_v37 = vpop.f32.mrf.mxu2 }
  0xd8   : > { %757 = vst.msk [vmem:[%s1352_s22 + $0x28] sm:$0xff] %vm751_vm3, %v724_v35  ;;  %v603_v38 = vadd.f32 %v1344_v51, %v602_v37 }
  0xd9   : > { %v565_v39 = vpop.f32.mrf.mxu0 }
  0xda   : > { %v566_v40 = vadd.f32 %v1344_v51, %v565_v39  ;;  %v692_v42 = vadd.f32 %v691_v17, %v603_v38 }
  0xdc   : > { %v655_v43 = vadd.f32 %v654_v16, %v566_v40  ;;  %v740_v44 = vmax.f32 %v692_v42, 0.0 }
  0xdd   : > { %v704_v16 = vpop.f32.mrf.mxu3 }
  0xde   : > { %v725_v45 = vmax.f32 %v655_v43, 0.0  ;;  %773 = vst.msk [vmem:[%s1352_s22 + $0xa8] sm:$0xff] %vm751_vm3, %v740_v44 }
  0xdf   : > { %v661_v46 = vpop.f32.mrf.mxu1  ;;  %v605_v47 = vpop.f32.mrf.mxu2 }
  0xe0   : > { %758 = vst.msk [vmem:[%s1352_s22 + $0x30] sm:$0xff] %vm751_vm3, %v725_v45  ;;  %v606_v48 = vadd.f32 %v1344_v51, %v605_v47 }
  0xe1   : > { %v567_v49 = vpop.f32.mrf.mxu0 }
  0xe2   : > { %v568_v50 = vadd.f32 %v1344_v51, %v567_v49  ;;  %v695_v52 = vadd.f32 %v694_v28, %v606_v48 }
  0xe4   : > { %v657_v53 = vadd.f32 %v656_v26, %v568_v50  ;;  %v741_v55 = vmax.f32 %v695_v52, 0.0  ;;  %v591_v52 = vadd.f32 %v1344_v51, %v1356_v58 }
  0xe5   : > { %v706_v29 = vpop.f32.mrf.mxu3 }
  0xe6   : > { %v726_v56 = vmax.f32 %v657_v53, 0.0  ;;  %774 = vst.msk [vmem:[%s1352_s22 + $0xb0] sm:$0xff] %vm751_vm3, %v741_v55 }
  0xe7   : > { %v664_v57 = vpop.f32.mrf.mxu1  ;;  %v607_v59 = vpop.f32.mrf.mxu2 }
  0xe8   : > { %759 = vst.msk [vmem:[%s1352_s22 + $0x38] sm:$0xff] %vm751_vm3, %v726_v56  ;;  %v608_v60 = vadd.f32 %v1344_v51, %v607_v59 }
  0xe9   : > { %v570_v61 = vpop.f32.mrf.mxu0 }
  0xea   : > { %v571_v62 = vadd.f32 %v1344_v51, %v570_v61  ;;  %v697_v63 = vadd.f32 %v696_v41, %v608_v60 }
  0xec   : > { %v660_v0 = vadd.f32 %v659_v36, %v571_v62  ;;  %v742_v2 = vmax.f32 %v697_v63, 0.0 }
  0xed   : > { %v709_v41 = vpop.f32.mrf.mxu3 }
  0xee   : > { %v727_v3 = vmax.f32 %v660_v0, 0.0  ;;  %775 = vst.msk [vmem:[%s1352_s22 + $0xb8] sm:$0xff] %vm751_vm3, %v742_v2  ;;  %v593_v2 = vadd.f32 %v1344_v51, %v1361_v1 }
  0xef   : > { %v666_v4 = vpop.f32.mrf.mxu1  ;;  %v610_v6 = vpop.f32.mrf.mxu2 }
  0xf0   : > { %760 = vst.msk [vmem:[%s1352_s22 + $0x40] sm:$0xff] %vm751_vm3, %v727_v3  ;;  %v611_v7 = vadd.f32 %v1344_v51, %v610_v6 }
  0xf1   : > { %v572_v8 = vpop.f32.mrf.mxu0 }
  0xf2   : > { %v573_v9 = vadd.f32 %v1344_v51, %v572_v8  ;;  %v700_v10 = vadd.f32 %v699_v54, %v611_v7 }
  0xf4   : > { %v662_v11 = vadd.f32 %v661_v46, %v573_v9  ;;  %v743_v12 = vmax.f32 %v700_v10, 0.0 }
  0xf5   : > { %v711_v55 = vpop.f32.mrf.mxu3 }
  0xf6   : > { %v728_v13 = vmax.f32 %v662_v11, 0.0  ;;  %776 = vst.msk [vmem:[%s1352_s22 + $0xc0] sm:$0xff] %vm751_vm3, %v743_v12 }
  0xf7   : > { %v669_v14 = vpop.f32.mrf.mxu1  ;;  %v612_v15 = vpop.f32.mrf.mxu2 }
  0xf8   : > { %761 = vst.msk [vmem:[%s1352_s22 + $0x48] sm:$0xff] %vm751_vm3, %v728_v13  ;;  %v613_v17 = vadd.f32 %v1344_v51, %v612_v15 }
  0xf9   : > { %v575_v18 = vpop.f32.mrf.mxu0 }
  0xfa   : > { %v576_v19 = vadd.f32 %v1344_v51, %v575_v18  ;;  %v702_v20 = vadd.f32 %v701_v5, %v613_v17 }
  0xfc   : > { %v665_v21 = vadd.f32 %v664_v57, %v576_v19  ;;  %v744_v22 = vmax.f32 %v702_v20, 0.0 }
  0xfd   : > { %v714_v7 = vpop.f32.mrf.mxu3 }
  0xfe   : > { %v729_v23 = vmax.f32 %v665_v21, 0.0  ;;  %777 = vst.msk [vmem:[%s1352_s22 + $0xc8] sm:$0xff] %vm751_vm3, %v744_v22 }
  0xff   : > { %v671_v24 = vpop.f32.mrf.mxu1  ;;  %v615_v25 = vpop.f32.mrf.mxu2 }
 0x100   : > { %762 = vst.msk [vmem:[%s1352_s22 + $0x50] sm:$0xff] %vm751_vm3, %v729_v23  ;;  %v616_v26 = vadd.f32 %v1344_v51, %v615_v25 }
 0x101   : > { %v577_v27 = vpop.f32.mrf.mxu0 }
 0x102   : > { %v578_v28 = vadd.f32 %v1344_v51, %v577_v27  ;;  %v705_v30 = vadd.f32 %v704_v16, %v616_v26 }
 0x104   : > { %v667_v31 = vadd.f32 %v666_v4, %v578_v28  ;;  %v745_v32 = vmax.f32 %v705_v30, 0.0 }
 0x105   : > { %v716_v18 = vpop.f32.mrf.mxu3 }
 0x106   : > { %v730_v33 = vmax.f32 %v667_v31, 0.0  ;;  %778 = vst.msk [vmem:[%s1352_s22 + $0xd0] sm:$0xff] %vm751_vm3, %v745_v32 }
 0x107   : > { %v674_v34 = vpop.f32.mrf.mxu1  ;;  %v617_v35 = vpop.f32.mrf.mxu2 }
 0x108   : > { %763 = vst.msk [vmem:[%s1352_s22 + $0x58] sm:$0xff] %vm751_vm3, %v730_v33  ;;  %v618_v36 = vadd.f32 %v1344_v51, %v617_v35 }
 0x109   : > { %v580_v37 = vpop.f32.mrf.mxu0 }
 0x10a   : > { %v581_v38 = vadd.f32 %v1344_v51, %v580_v37  ;;  %v707_v39 = vadd.f32 %v706_v29, %v618_v36 }
 0x10c   : > { %v670_v40 = vadd.f32 %v669_v14, %v581_v38  ;;  %v746_v42 = vmax.f32 %v707_v39, 0.0 }
 0x10e   : > { %v731_v43 = vmax.f32 %v670_v40, 0.0  ;;  %779 = vst.msk [vmem:[%s1352_s22 + $0xd8] sm:$0xff] %vm751_vm3, %v746_v42 }
 0x10f   : > { %v676_v44 = vpop.f32.mrf.mxu1  ;;  %v620_v45 = vpop.f32.mrf.mxu2 }
 0x110   : > { %764 = vst.msk [vmem:[%s1352_s22 + $0x60] sm:$0xff] %vm751_vm3, %v731_v43  ;;  %v621_v46 = vadd.f32 %v1344_v51, %v620_v45 }
 0x111   : > { %v582_v47 = vpop.f32.mrf.mxu0 }
 0x112   : > { %v583_v48 = vadd.f32 %v1344_v51, %v582_v47  ;;  %v710_v49 = vadd.f32 %v709_v41, %v621_v46 }
 0x114   : > { %v672_v50 = vadd.f32 %v671_v24, %v583_v48  ;;  %v747_v53 = vmax.f32 %v710_v49, 0.0 }
 0x116   : > { %v732_v54 = vmax.f32 %v672_v50, 0.0  ;;  %780 = vst.msk [vmem:[%s1352_s22 + $0xe0] sm:$0xff] %vm751_vm3, %v747_v53 }
 0x117   : > { %v679_v56 = vpop.f32.mrf.mxu1  ;;  %v622_v59 = vpop.f32.mrf.mxu2 }
 0x118   : > { %v680_v57 = vadd.f32 %v679_v56, %v591_v52  ;;  %765 = vst.msk [vmem:[%s1352_s22 + $0x68] sm:$0xff] %vm751_vm3, %v732_v54  ;;  %v623_v61 = vadd.f32 %v1344_v51, %v622_v59 }
 0x119   : > { %v585_v62 = vpop.f32.mrf.mxu0 }
 0x11a   : > { %v735_v60 = vmax.f32 %v680_v57, 0.0  ;;  %v586_v63 = vadd.f32 %v1344_v51, %v585_v62  ;;  %v712_v58 = vadd.f32 %v711_v55, %v623_v61 }
 0x11c   : > { %768 = vst.msk [vmem:[%s1352_s22 + $0x80] sm:$0xff] %vm751_vm3, %v735_v60  ;;  %v675_v0 = vadd.f32 %v674_v34, %v586_v63  ;;  %v748_v3 = vmax.f32 %v712_v58, 0.0 }
 0x11e   : > { %v733_v4 = vmax.f32 %v675_v0, 0.0  ;;  %781 = vst.msk [vmem:[%s1352_s22 + $0xe8] sm:$0xff] %vm751_vm3, %v748_v3 }
 0x11f   : > { %v681_v5 = vpop.f32.mrf.mxu1  ;;  %v625_v8 = vpop.f32.mrf.mxu2 }
 0x120   : > { %v682_v6 = vadd.f32 %v681_v5, %v593_v2  ;;  %766 = vst.msk [vmem:[%s1352_s22 + $0x70] sm:$0xff] %vm751_vm3, %v733_v4  ;;  %v626_v10 = vadd.f32 %v1344_v51, %v625_v8 }
 0x121   : > { %v587_v11 = vpop.f32.mrf.mxu0 }
 0x122   : > { %v736_v9 = vmax.f32 %v682_v6, 0.0  ;;  %v588_v12 = vadd.f32 %v1344_v51, %v587_v11  ;;  %v715_v1 = vadd.f32 %v714_v7, %v626_v10 }
 0x124   : > { %769 = vst.msk [vmem:[%s1352_s22 + $0x88] sm:$0xff] %vm751_vm3, %v736_v9  ;;  %v677_v13 = vadd.f32 %v676_v44, %v588_v12  ;;  %v749_v14 = vmax.f32 %v715_v1, 0.0 }
 0x126   : > { %v734_v15 = vmax.f32 %v677_v13, 0.0  ;;  %782 = vst.msk [vmem:[%s1352_s22 + $0xf0] sm:$0xff] %vm751_vm3, %v749_v14 }
 0x127   : > { %v627_v16 = vpop.f32.mrf.mxu2 }
 0x128   : > { %767 = vst.msk [vmem:[%s1352_s22 + $0x78] sm:$0xff] %vm751_vm3, %v734_v15  ;;  %v628_v17 = vadd.f32 %v1344_v51, %v627_v16 }
 0x12a   : > { %v717_v19 = vadd.f32 %v716_v18, %v628_v17 }
 0x12c   : > { %v750_v20 = vmax.f32 %v717_v19, 0.0 }
 0x12e   : > { %783 = vst.msk [vmem:[%s1352_s22 + $0xf8] sm:$0xff] %vm751_vm3, %v750_v20 }
 0x12f PF: > { %s13_s14 = sadd.s32 1, %s1180_s14   ;;  %s1468_s12 = smov %s1176_s13 }
 0x130   : > { %p10_p5 = scmp.ge.s32.totalorder %s13_s14, 100   ;;  %s1469_s13 = smov %s1471_s15 }
 0x132   :  { %12 = sbr.rel (!%p10_p5) target bundleno = 2 (0x2), region = 68 }

</bundles_post_ra>
